<compile_context>
chip_gen: v6e
topology: v6e:2x2x1
jax: 0.10.0
libtpu: 0.0.40
codegen_flags: <defaults>
</compile_context>

<pallas_src>
import jax
import jax.numpy as jnp
from jax.experimental import pallas as pl
from jax.experimental.pallas import tpu as pltpu

# ----------------------------- configuration -------------------------------
B = 2            # batch
C_IMG = 3        # image channels (NCHW input)
IMG_HW = 16      # spatial size
TOKENS_PER_IMG = C_IMG * IMG_HW          # 48 per-channel scanline tokens per image
TOK_DIM = IMG_HW                         # 16 pixels per token (first matmul K)
H_FEAT = 128                             # pooled backbone feature width
N_EXTRA = 10                             # bbox(3)+focal(2)+scale(1)+center(2)+orig(2)
D_HID = 256                              # MLP hidden width
D_OUT = 256                              # padded head output (157 used)
N_JOINTS = 24
N_BETAS = 10
N_VERTS = 128                            # synthetic SMPL vertex count
VERT_FLAT = N_VERTS * 3                  # 384

# head lane layout: [shape(10) | cam(3) | pose6d(144) | zero pad]
OFF_SHAPE = 0
OFF_CAM = N_BETAS                        # 10
OFF_POSE = N_BETAS + 3                   # 13
POSE_DIM = N_JOINTS * 6                  # 144
HEAD_USED = OFF_POSE + POSE_DIM          # 157


# ------------------------------ fused kernel --------------------------------
def poco_fused_kernel(rows_ref, extras_ref,
                      w_tok_ref, b_tok_ref,
                      w1a_ref, w1x_ref, b1_ref,
                      w2_ref, b2_ref,
                      shapedirs_ref, v_template_ref,
                      head_ref, verts_ref):
    """Whole POCO-like forward in one kernel invocation.

    rows_ref   : (B*48, 16) f32   per-channel scanline tokens (free NCHW view)
    extras_ref : (B, 10)    f32   unnormalized conditioning scalars (f32 path)
    weights    : bf16 for MXU operands, f32 for the tiny VPU paths / biases
    head_ref   : (B, 256) f32     [betas(10) | cam(3) | pose6d(144) | 0-pad]
    verts_ref  : (B, 384) f32     flattened SMPL vertices
    """
    bsz = extras_ref.shape[0]

    # ---- backbone: token embed (bf16 MXU, f32 accumulate) + f32 ReLU ----
    tok = rows_ref[...].astype(jnp.bfloat16)                              # (B*48, 16)
    h = jnp.dot(tok, w_tok_ref[...], preferred_element_type=jnp.float32)  # (B*48, 128)
    h = jnp.maximum(h + b_tok_ref[...], 0.0)

    # ---- mean-pool over the 48 tokens of each image ----
    # (B*48,128)->(B,48,128) is sublane-aligned (48 = 6*8 for f32) -> layout-free;
    # the reduce goes to the XLU, no MXU matmul and no pool-matrix input needed.
    feat = jnp.mean(h.reshape(bsz, TOKENS_PER_IMG, H_FEAT), axis=1)       # (B, 128)

    # ---- layer 1 (split): image features on MXU, extras on an f32 VPU path ----
    h1 = jnp.dot(feat.astype(jnp.bfloat16), w1a_ref[...],
                 preferred_element_type=jnp.float32)                      # (B, 256)
    ex = extras_ref[...]                                                  # (B, 10) f32
    w1x = w1x_ref[...]                                                    # (10, 256) f32
    for k in range(N_EXTRA):                                              # tiny, unrolled
        h1 = h1 + ex[:, k:k + 1] * w1x[k:k + 1, :]
    h1 = jnp.maximum(h1 + b1_ref[...], 0.0)

    # ---- layer 2 regressor head ----
    head = jnp.dot(h1.astype(jnp.bfloat16), w2_ref[...],
                   preferred_element_type=jnp.float32) + b2_ref[...]      # (B, 256)
    head_ref[...] = head

    # ---- SMPL linear shape blendshapes, fully f32 (betas at lanes [0,10)) ----
    sd = shapedirs_ref[...]                                               # (10, 384) f32
    verts = jnp.zeros((bsz, VERT_FLAT), jnp.float32)
    for k in range(N_BETAS):
        verts = verts + head[:, k:k + 1] * sd[k:k + 1, :]
    verts_ref[...] = verts + v_template_ref[...]


# --------------------------- pallas_call wrapper -----------------------------
def _spec(shape):
    nd = len(shape)
    return pl.BlockSpec(shape, lambda i, _nd=nd: (0,) * _nd)


def poco_fused(rows, extras, params):
    bsz = extras.shape[0]
    ins = (rows, extras,
           params["w_tok"], params["b_tok"],
           params["w1a"], params["w1x"], params["b1"],
           params["w2"], params["b2"],
           params["shapedirs"], params["v_template"])

    flops = (2 * rows.shape[0] * TOK_DIM * H_FEAT      # token embed
             + rows.shape[0] * H_FEAT                  # pooling reduce
             + 2 * bsz * H_FEAT * D_HID                # feat @ w1a
             + 2 * bsz * N_EXTRA * D_HID               # extras f32 path
             + 2 * bsz * D_HID * D_OUT                 # h1 @ w2
             + 2 * bsz * N_BETAS * VERT_FLAT)          # betas @ shapedirs
    bytes_accessed = (sum(int(a.size) * a.dtype.itemsize for a in ins)
                      + bsz * (D_OUT + VERT_FLAT) * 4)

    return pl.pallas_call(
        poco_fused_kernel,
        out_shape=(jax.ShapeDtypeStruct((bsz, D_OUT), jnp.float32),
                   jax.ShapeDtypeStruct((bsz, VERT_FLAT), jnp.float32)),
        grid=(1,),
        in_specs=[_spec(a.shape) for a in ins],
        out_specs=[_spec((bsz, D_OUT)), _spec((bsz, VERT_FLAT))],
        compiler_params=pltpu.CompilerParams(dimension_semantics=("arbitrary",)),
        cost_estimate=pl.CostEstimate(flops=flops, transcendentals=0,
                                      bytes_accessed=bytes_accessed),
    )(*ins)


# --------------------------------- glue -------------------------------------
def rot6d_to_rotmat(x6d):
    """(B, 24, 6) -> (B, 24, 3, 3) via Gram-Schmidt (standard 6D rot rep)."""
    a1, a2 = x6d[..., 0:3], x6d[..., 3:6]
    b1 = a1 / (jnp.linalg.norm(a1, axis=-1, keepdims=True) + 1e-8)
    b2 = a2 - jnp.sum(b1 * a2, axis=-1, keepdims=True) * b1
    b2 = b2 / (jnp.linalg.norm(b2, axis=-1, keepdims=True) + 1e-8)
    b3 = jnp.cross(b1, b2)
    return jnp.stack([b1, b2, b3], axis=-1)


def init_params():
    keys = jax.random.split(jax.random.PRNGKey(42), 6)
    # zero the unused head padding columns (lanes >= 157) so head carries no garbage
    col_mask = (jnp.arange(D_OUT) < HEAD_USED).astype(jnp.float32)
    w2 = jax.random.normal(keys[2], (D_HID, D_OUT), jnp.float32) * 0.05 * col_mask
    return {
        # bf16 MXU operands; f32 for biases and the small exact VPU paths
        "w_tok": (jax.random.normal(keys[0], (TOK_DIM, H_FEAT), jnp.float32) * 0.05
                  ).astype(jnp.bfloat16),
        "b_tok": jnp.zeros((1, H_FEAT), jnp.float32),
        "w1a": (jax.random.normal(keys[1], (H_FEAT, D_HID), jnp.float32) * 0.05
                ).astype(jnp.bfloat16),
        "w1x": jax.random.normal(keys[5], (N_EXTRA, D_HID), jnp.float32) * 0.002,
        "b1": jnp.zeros((1, D_HID), jnp.float32),
        "w2": w2.astype(jnp.bfloat16),
        "b2": jnp.zeros((1, D_OUT), jnp.float32),
        # synthetic SMPL: vertex template (flat) + linear shape blendshapes (f32)
        "v_template": jax.random.normal(keys[3], (1, VERT_FLAT), jnp.float32) * 0.1,
        "shapedirs": jax.random.normal(keys[4], (N_BETAS, VERT_FLAT), jnp.float32) * 0.01,
    }


def poco_forward(params, img, bbox_info, focal_length, scale, center, orig_shape):
    bsz = img.shape[0]

    # NCHW -> per-channel scanline tokens: pure row-major view (no transpose/pad/gather)
    rows = img.reshape(bsz * C_IMG * IMG_HW, IMG_HW)                    # (B*48, 16) f32
    extras = jnp.concatenate(
        [bbox_info, focal_length, scale[:, None], center, orig_shape], axis=-1
    ).astype(jnp.float32)                                               # (B, 10)

    # ---- single fused Pallas kernel: backbone + head + shape blendshapes ----
    head, verts_flat = poco_fused(rows, extras, params)                 # (B,256), (B,384)

    pred_shape = head[:, OFF_SHAPE:OFF_SHAPE + N_BETAS]                 # (B, 10)
    pred_cam = head[:, OFF_CAM:OFF_CAM + 3]                             # (B, 3)
    pose6d = head[:, OFF_POSE:OFF_POSE + POSE_DIM].reshape(bsz, N_JOINTS, 6)
    pred_pose = rot6d_to_rotmat(pose6d)                                 # (B, 24, 3, 3)
    # TODO(synk): 6D-rot Gram-Schmidt stays in the wrapper (3-wide lane vectors
    # would force a Mosaic relayout); XLA fuses this tiny elementwise chain.
    smpl_vertices = verts_flat.reshape(bsz, N_VERTS, 3)
    # TODO(synk): full SMPL LBS (pose blendshapes + skinning) of the original
    # POCO checkpoint is not reproducible without its weights; linear shape
    # blendshapes only.

    # wrapper contract: ('pred_pose', 'pred_shape', 'pred_cam', 'smpl_vertices')
    return pred_pose, pred_shape, pred_cam, smpl_vertices


if __name__ == "__main__":
    params = init_params()

    key = jax.random.PRNGKey(0)
    k_img, k_bbox, k_focal, k_scale, k_center = jax.random.split(key, 5)
    img = jax.random.normal(k_img, (B, C_IMG, IMG_HW, IMG_HW), jnp.float32)   # NCHW
    bbox_info = jax.random.normal(k_bbox, (B, 3), jnp.float32)
    focal_length = 500.0 + 10.0 * jax.random.normal(k_focal, (B, 2), jnp.float32)
    scale = 1.0 + 0.1 * jax.random.normal(k_scale, (B,), jnp.float32)
    center = 100.0 * jax.random.uniform(k_center, (B, 2), jnp.float32)
    orig_shape = jnp.tile(jnp.array([[480.0, 640.0]], jnp.float32), (B, 1))

    forward = jax.jit(poco_forward)
    outs = forward(params, img, bbox_info, focal_length, scale, center, orig_shape)
    outs = jax.block_until_ready(outs)

    pred_pose, pred_shape, pred_cam, smpl_vertices = outs
    assert pred_pose.shape == (B, N_JOINTS, 3, 3)
    assert pred_shape.shape == (B, N_BETAS)
    assert pred_cam.shape == (B, 3)
    assert smpl_vertices.shape == (B, N_VERTS, 3)
    assert all(bool(jnp.all(jnp.isfinite(o))) for o in outs)
    print("KERNEL_OK")
</pallas_src>

<mosaic_0001>
module attributes {stable_mosaic.version = 11 : i64} {
  func.func @poco_fused_kernel(%arg0: i32, %arg1: memref<96x16xf32, #tpu.memory_space<vmem>>, %arg2: memref<2x10xf32, #tpu.memory_space<vmem>>, %arg3: memref<16x128xbf16, #tpu.memory_space<vmem>>, %arg4: memref<1x128xf32, #tpu.memory_space<vmem>>, %arg5: memref<128x256xbf16, #tpu.memory_space<vmem>>, %arg6: memref<10x256xf32, #tpu.memory_space<vmem>>, %arg7: memref<1x256xf32, #tpu.memory_space<vmem>>, %arg8: memref<256x256xbf16, #tpu.memory_space<vmem>>, %arg9: memref<1x256xf32, #tpu.memory_space<vmem>>, %arg10: memref<10x384xf32, #tpu.memory_space<vmem>>, %arg11: memref<1x384xf32, #tpu.memory_space<vmem>>, %arg12: memref<2x256xf32, #tpu.memory_space<vmem>>, %arg13: memref<2x384xf32, #tpu.memory_space<vmem>>) attributes {dimension_semantics = [#tpu.dimension_semantics<arbitrary>], iteration_bounds = array<i64: 1>, scalar_prefetch = 0 : i64, scratch_operands = 0 : i64, tpu.core_type = #tpu.core_type<tc>, window_params = [{pipeline_mode = #tpu.pipeline_mode<synchronous>, transform_indices = @transform_0, window_bounds = array<i64: 96, 16>}, {pipeline_mode = #tpu.pipeline_mode<synchronous>, transform_indices = @transform_1, window_bounds = array<i64: 2, 10>}, {pipeline_mode = #tpu.pipeline_mode<synchronous>, transform_indices = @transform_2, window_bounds = array<i64: 16, 128>}, {pipeline_mode = #tpu.pipeline_mode<synchronous>, transform_indices = @transform_3, window_bounds = array<i64: 1, 128>}, {pipeline_mode = #tpu.pipeline_mode<synchronous>, transform_indices = @transform_4, window_bounds = array<i64: 128, 256>}, {pipeline_mode = #tpu.pipeline_mode<synchronous>, transform_indices = @transform_5, window_bounds = array<i64: 10, 256>}, {pipeline_mode = #tpu.pipeline_mode<synchronous>, transform_indices = @transform_6, window_bounds = array<i64: 1, 256>}, {pipeline_mode = #tpu.pipeline_mode<synchronous>, transform_indices = @transform_7, window_bounds = array<i64: 256, 256>}, {pipeline_mode = #tpu.pipeline_mode<synchronous>, transform_indices = @transform_8, window_bounds = array<i64: 1, 256>}, {pipeline_mode = #tpu.pipeline_mode<synchronous>, transform_indices = @transform_9, window_bounds = array<i64: 10, 384>}, {pipeline_mode = #tpu.pipeline_mode<synchronous>, transform_indices = @transform_10, window_bounds = array<i64: 1, 384>}, {pipeline_mode = #tpu.pipeline_mode<synchronous>, transform_indices = @transform_11, window_bounds = array<i64: 2, 256>}, {pipeline_mode = #tpu.pipeline_mode<synchronous>, transform_indices = @transform_12, window_bounds = array<i64: 2, 384>}]} {
    %c0 = arith.constant 0 : index
    %c0_0 = arith.constant 0 : index
    %0 = vector.load %arg1[%c0, %c0_0] : memref<96x16xf32, #tpu.memory_space<vmem>>, vector<96x16xf32>
    %1 = arith.truncf %0 : vector<96x16xf32> to vector<96x16xbf16>
    %c0_1 = arith.constant 0 : index
    %c0_2 = arith.constant 0 : index
    %2 = vector.load %arg3[%c0_1, %c0_2] : memref<16x128xbf16, #tpu.memory_space<vmem>>, vector<16x128xbf16>
    %cst = arith.constant dense<0.000000e+00> : vector<96x128xf32>
    %3 = tpu.matmul %1, %2, %cst {dimension_numbers = #tpu.dot_dimension_numbers<[1], [0], [0], [1], [0, 0, 1, 1], [], []>} : vector<96x16xbf16>, vector<16x128xbf16>, vector<96x128xf32> -> vector<96x128xf32>
    %c0_3 = arith.constant 0 : index
    %c0_4 = arith.constant 0 : index
    %4 = vector.load %arg4[%c0_3, %c0_4] : memref<1x128xf32, #tpu.memory_space<vmem>>, vector<1x128xf32>
    %5 = vector.broadcast %4 : vector<1x128xf32> to vector<96x128xf32>
    %6 = arith.addf %3, %5 : vector<96x128xf32>
    %cst_5 = arith.constant 0.000000e+00 : f32
    %7 = vector.broadcast %cst_5 : f32 to vector<96x128xf32>
    %8 = arith.maximumf %6, %7 : vector<96x128xf32>
    %9 = vector.shape_cast %8 : vector<96x128xf32> to vector<2x48x128xf32>
    %cst_6 = arith.constant dense<0.000000e+00> : vector<2x128xf32>
    %10 = vector.multi_reduction <add>, %9, %cst_6 [1] : vector<2x48x128xf32> to vector<2x128xf32>
    %cst_7 = arith.constant 4.800000e+01 : f32
    %11 = vector.broadcast %cst_7 : f32 to vector<2x128xf32>
    %12 = arith.divf %10, %11 : vector<2x128xf32>
    %13 = arith.truncf %12 : vector<2x128xf32> to vector<2x128xbf16>
    %c0_8 = arith.constant 0 : index
    %c0_9 = arith.constant 0 : index
    %14 = vector.load %arg5[%c0_8, %c0_9] : memref<128x256xbf16, #tpu.memory_space<vmem>>, vector<128x256xbf16>
    %cst_10 = arith.constant dense<0.000000e+00> : vector<2x256xf32>
    %15 = tpu.matmul %13, %14, %cst_10 {dimension_numbers = #tpu.dot_dimension_numbers<[1], [0], [0], [1], [0, 0, 1, 1], [], []>} : vector<2x128xbf16>, vector<128x256xbf16>, vector<2x256xf32> -> vector<2x256xf32>
    %c0_11 = arith.constant 0 : index
    %c0_12 = arith.constant 0 : index
    %16 = vector.load %arg2[%c0_11, %c0_12] : memref<2x10xf32, #tpu.memory_space<vmem>>, vector<2x10xf32>
    %c0_13 = arith.constant 0 : index
    %c0_14 = arith.constant 0 : index
    %17 = vector.load %arg6[%c0_13, %c0_14] : memref<10x256xf32, #tpu.memory_space<vmem>>, vector<10x256xf32>
    %18 = vector.extract_strided_slice %16 {offsets = [0, 0], sizes = [2, 1], strides = [1, 1]} : vector<2x10xf32> to vector<2x1xf32>
    %19 = vector.extract_strided_slice %17 {offsets = [0, 0], sizes = [1, 256], strides = [1, 1]} : vector<10x256xf32> to vector<1x256xf32>
    %20 = vector.broadcast %18 : vector<2x1xf32> to vector<2x256xf32>
    %21 = vector.broadcast %19 : vector<1x256xf32> to vector<2x256xf32>
    %22 = arith.mulf %20, %21 : vector<2x256xf32>
    %23 = arith.addf %15, %22 : vector<2x256xf32>
    %24 = vector.extract_strided_slice %16 {offsets = [0, 1], sizes = [2, 1], strides = [1, 1]} : vector<2x10xf32> to vector<2x1xf32>
    %25 = vector.extract_strided_slice %17 {offsets = [1, 0], sizes = [1, 256], strides = [1, 1]} : vector<10x256xf32> to vector<1x256xf32>
    %26 = vector.broadcast %24 : vector<2x1xf32> to vector<2x256xf32>
    %27 = vector.broadcast %25 : vector<1x256xf32> to vector<2x256xf32>
    %28 = arith.mulf %26, %27 : vector<2x256xf32>
    %29 = arith.addf %23, %28 : vector<2x256xf32>
    %30 = vector.extract_strided_slice %16 {offsets = [0, 2], sizes = [2, 1], strides = [1, 1]} : vector<2x10xf32> to vector<2x1xf32>
    %31 = vector.extract_strided_slice %17 {offsets = [2, 0], sizes = [1, 256], strides = [1, 1]} : vector<10x256xf32> to vector<1x256xf32>
    %32 = vector.broadcast %30 : vector<2x1xf32> to vector<2x256xf32>
    %33 = vector.broadcast %31 : vector<1x256xf32> to vector<2x256xf32>
    %34 = arith.mulf %32, %33 : vector<2x256xf32>
    %35 = arith.addf %29, %34 : vector<2x256xf32>
    %36 = vector.extract_strided_slice %16 {offsets = [0, 3], sizes = [2, 1], strides = [1, 1]} : vector<2x10xf32> to vector<2x1xf32>
    %37 = vector.extract_strided_slice %17 {offsets = [3, 0], sizes = [1, 256], strides = [1, 1]} : vector<10x256xf32> to vector<1x256xf32>
    %38 = vector.broadcast %36 : vector<2x1xf32> to vector<2x256xf32>
    %39 = vector.broadcast %37 : vector<1x256xf32> to vector<2x256xf32>
    %40 = arith.mulf %38, %39 : vector<2x256xf32>
    %41 = arith.addf %35, %40 : vector<2x256xf32>
    %42 = vector.extract_strided_slice %16 {offsets = [0, 4], sizes = [2, 1], strides = [1, 1]} : vector<2x10xf32> to vector<2x1xf32>
    %43 = vector.extract_strided_slice %17 {offsets = [4, 0], sizes = [1, 256], strides = [1, 1]} : vector<10x256xf32> to vector<1x256xf32>
    %44 = vector.broadcast %42 : vector<2x1xf32> to vector<2x256xf32>
    %45 = vector.broadcast %43 : vector<1x256xf32> to vector<2x256xf32>
    %46 = arith.mulf %44, %45 : vector<2x256xf32>
    %47 = arith.addf %41, %46 : vector<2x256xf32>
    %48 = vector.extract_strided_slice %16 {offsets = [0, 5], sizes = [2, 1], strides = [1, 1]} : vector<2x10xf32> to vector<2x1xf32>
    %49 = vector.extract_strided_slice %17 {offsets = [5, 0], sizes = [1, 256], strides = [1, 1]} : vector<10x256xf32> to vector<1x256xf32>
    %50 = vector.broadcast %48 : vector<2x1xf32> to vector<2x256xf32>
    %51 = vector.broadcast %49 : vector<1x256xf32> to vector<2x256xf32>
    %52 = arith.mulf %50, %51 : vector<2x256xf32>
    %53 = arith.addf %47, %52 : vector<2x256xf32>
    %54 = vector.extract_strided_slice %16 {offsets = [0, 6], sizes = [2, 1], strides = [1, 1]} : vector<2x10xf32> to vector<2x1xf32>
    %55 = vector.extract_strided_slice %17 {offsets = [6, 0], sizes = [1, 256], strides = [1, 1]} : vector<10x256xf32> to vector<1x256xf32>
    %56 = vector.broadcast %54 : vector<2x1xf32> to vector<2x256xf32>
    %57 = vector.broadcast %55 : vector<1x256xf32> to vector<2x256xf32>
    %58 = arith.mulf %56, %57 : vector<2x256xf32>
    %59 = arith.addf %53, %58 : vector<2x256xf32>
    %60 = vector.extract_strided_slice %16 {offsets = [0, 7], sizes = [2, 1], strides = [1, 1]} : vector<2x10xf32> to vector<2x1xf32>
    %61 = vector.extract_strided_slice %17 {offsets = [7, 0], sizes = [1, 256], strides = [1, 1]} : vector<10x256xf32> to vector<1x256xf32>
    %62 = vector.broadcast %60 : vector<2x1xf32> to vector<2x256xf32>
    %63 = vector.broadcast %61 : vector<1x256xf32> to vector<2x256xf32>
    %64 = arith.mulf %62, %63 : vector<2x256xf32>
    %65 = arith.addf %59, %64 : vector<2x256xf32>
    %66 = vector.extract_strided_slice %16 {offsets = [0, 8], sizes = [2, 1], strides = [1, 1]} : vector<2x10xf32> to vector<2x1xf32>
    %67 = vector.extract_strided_slice %17 {offsets = [8, 0], sizes = [1, 256], strides = [1, 1]} : vector<10x256xf32> to vector<1x256xf32>
    %68 = vector.broadcast %66 : vector<2x1xf32> to vector<2x256xf32>
    %69 = vector.broadcast %67 : vector<1x256xf32> to vector<2x256xf32>
    %70 = arith.mulf %68, %69 : vector<2x256xf32>
    %71 = arith.addf %65, %70 : vector<2x256xf32>
    %72 = vector.extract_strided_slice %16 {offsets = [0, 9], sizes = [2, 1], strides = [1, 1]} : vector<2x10xf32> to vector<2x1xf32>
    %73 = vector.extract_strided_slice %17 {offsets = [9, 0], sizes = [1, 256], strides = [1, 1]} : vector<10x256xf32> to vector<1x256xf32>
    %74 = vector.broadcast %72 : vector<2x1xf32> to vector<2x256xf32>
    %75 = vector.broadcast %73 : vector<1x256xf32> to vector<2x256xf32>
    %76 = arith.mulf %74, %75 : vector<2x256xf32>
    %77 = arith.addf %71, %76 : vector<2x256xf32>
    %c0_15 = arith.constant 0 : index
    %c0_16 = arith.constant 0 : index
    %78 = vector.load %arg7[%c0_15, %c0_16] : memref<1x256xf32, #tpu.memory_space<vmem>>, vector<1x256xf32>
    %79 = vector.broadcast %78 : vector<1x256xf32> to vector<2x256xf32>
    %80 = arith.addf %77, %79 : vector<2x256xf32>
    %cst_17 = arith.constant 0.000000e+00 : f32
    %81 = vector.broadcast %cst_17 : f32 to vector<2x256xf32>
    %82 = arith.maximumf %80, %81 : vector<2x256xf32>
    %83 = arith.truncf %82 : vector<2x256xf32> to vector<2x256xbf16>
    %c0_18 = arith.constant 0 : index
    %c0_19 = arith.constant 0 : index
    %84 = vector.load %arg8[%c0_18, %c0_19] : memref<256x256xbf16, #tpu.memory_space<vmem>>, vector<256x256xbf16>
    %cst_20 = arith.constant dense<0.000000e+00> : vector<2x256xf32>
    %85 = tpu.matmul %83, %84, %cst_20 {dimension_numbers = #tpu.dot_dimension_numbers<[1], [0], [0], [1], [0, 0, 1, 1], [], []>} : vector<2x256xbf16>, vector<256x256xbf16>, vector<2x256xf32> -> vector<2x256xf32>
    %c0_21 = arith.constant 0 : index
    %c0_22 = arith.constant 0 : index
    %86 = vector.load %arg9[%c0_21, %c0_22] : memref<1x256xf32, #tpu.memory_space<vmem>>, vector<1x256xf32>
    %87 = vector.broadcast %86 : vector<1x256xf32> to vector<2x256xf32>
    %88 = arith.addf %85, %87 : vector<2x256xf32>
    %c0_23 = arith.constant 0 : index
    %c0_24 = arith.constant 0 : index
    %89 = vector.load %arg12[%c0_23, %c0_24] : memref<2x256xf32, #tpu.memory_space<vmem>>, vector<2x256xf32>
    tpu.vector_store %arg12[%c0_23, %c0_24], %88 {strides = array<i32>} : memref<2x256xf32, #tpu.memory_space<vmem>>, vector<2x256xf32>,
    %c0_25 = arith.constant 0 : index
    %c0_26 = arith.constant 0 : index
    %90 = vector.load %arg10[%c0_25, %c0_26] : memref<10x384xf32, #tpu.memory_space<vmem>>, vector<10x384xf32>
    %cst_27 = arith.constant 0.000000e+00 : f32
    %91 = vector.broadcast %cst_27 : f32 to vector<2x384xf32>
    %92 = vector.extract_strided_slice %88 {offsets = [0, 0], sizes = [2, 1], strides = [1, 1]} : vector<2x256xf32> to vector<2x1xf32>
    %93 = vector.extract_strided_slice %90 {offsets = [0, 0], sizes = [1, 384], strides = [1, 1]} : vector<10x384xf32> to vector<1x384xf32>
    %94 = vector.broadcast %92 : vector<2x1xf32> to vector<2x384xf32>
    %95 = vector.broadcast %93 : vector<1x384xf32> to vector<2x384xf32>
    %96 = arith.mulf %94, %95 : vector<2x384xf32>
    %97 = arith.addf %91, %96 : vector<2x384xf32>
    %98 = vector.extract_strided_slice %88 {offsets = [0, 1], sizes = [2, 1], strides = [1, 1]} : vector<2x256xf32> to vector<2x1xf32>
    %99 = vector.extract_strided_slice %90 {offsets = [1, 0], sizes = [1, 384], strides = [1, 1]} : vector<10x384xf32> to vector<1x384xf32>
    %100 = vector.broadcast %98 : vector<2x1xf32> to vector<2x384xf32>
    %101 = vector.broadcast %99 : vector<1x384xf32> to vector<2x384xf32>
    %102 = arith.mulf %100, %101 : vector<2x384xf32>
    %103 = arith.addf %97, %102 : vector<2x384xf32>
    %104 = vector.extract_strided_slice %88 {offsets = [0, 2], sizes = [2, 1], strides = [1, 1]} : vector<2x256xf32> to vector<2x1xf32>
    %105 = vector.extract_strided_slice %90 {offsets = [2, 0], sizes = [1, 384], strides = [1, 1]} : vector<10x384xf32> to vector<1x384xf32>
    %106 = vector.broadcast %104 : vector<2x1xf32> to vector<2x384xf32>
    %107 = vector.broadcast %105 : vector<1x384xf32> to vector<2x384xf32>
    %108 = arith.mulf %106, %107 : vector<2x384xf32>
    %109 = arith.addf %103, %108 : vector<2x384xf32>
    %110 = vector.extract_strided_slice %88 {offsets = [0, 3], sizes = [2, 1], strides = [1, 1]} : vector<2x256xf32> to vector<2x1xf32>
    %111 = vector.extract_strided_slice %90 {offsets = [3, 0], sizes = [1, 384], strides = [1, 1]} : vector<10x384xf32> to vector<1x384xf32>
    %112 = vector.broadcast %110 : vector<2x1xf32> to vector<2x384xf32>
    %113 = vector.broadcast %111 : vector<1x384xf32> to vector<2x384xf32>
    %114 = arith.mulf %112, %113 : vector<2x384xf32>
    %115 = arith.addf %109, %114 : vector<2x384xf32>
    %116 = vector.extract_strided_slice %88 {offsets = [0, 4], sizes = [2, 1], strides = [1, 1]} : vector<2x256xf32> to vector<2x1xf32>
    %117 = vector.extract_strided_slice %90 {offsets = [4, 0], sizes = [1, 384], strides = [1, 1]} : vector<10x384xf32> to vector<1x384xf32>
    %118 = vector.broadcast %116 : vector<2x1xf32> to vector<2x384xf32>
    %119 = vector.broadcast %117 : vector<1x384xf32> to vector<2x384xf32>
    %120 = arith.mulf %118, %119 : vector<2x384xf32>
    %121 = arith.addf %115, %120 : vector<2x384xf32>
    %122 = vector.extract_strided_slice %88 {offsets = [0, 5], sizes = [2, 1], strides = [1, 1]} : vector<2x256xf32> to vector<2x1xf32>
    %123 = vector.extract_strided_slice %90 {offsets = [5, 0], sizes = [1, 384], strides = [1, 1]} : vector<10x384xf32> to vector<1x384xf32>
    %124 = vector.broadcast %122 : vector<2x1xf32> to vector<2x384xf32>
    %125 = vector.broadcast %123 : vector<1x384xf32> to vector<2x384xf32>
    %126 = arith.mulf %124, %125 : vector<2x384xf32>
    %127 = arith.addf %121, %126 : vector<2x384xf32>
    %128 = vector.extract_strided_slice %88 {offsets = [0, 6], sizes = [2, 1], strides = [1, 1]} : vector<2x256xf32> to vector<2x1xf32>
    %129 = vector.extract_strided_slice %90 {offsets = [6, 0], sizes = [1, 384], strides = [1, 1]} : vector<10x384xf32> to vector<1x384xf32>
    %130 = vector.broadcast %128 : vector<2x1xf32> to vector<2x384xf32>
    %131 = vector.broadcast %129 : vector<1x384xf32> to vector<2x384xf32>
    %132 = arith.mulf %130, %131 : vector<2x384xf32>
    %133 = arith.addf %127, %132 : vector<2x384xf32>
    %134 = vector.extract_strided_slice %88 {offsets = [0, 7], sizes = [2, 1], strides = [1, 1]} : vector<2x256xf32> to vector<2x1xf32>
    %135 = vector.extract_strided_slice %90 {offsets = [7, 0], sizes = [1, 384], strides = [1, 1]} : vector<10x384xf32> to vector<1x384xf32>
    %136 = vector.broadcast %134 : vector<2x1xf32> to vector<2x384xf32>
    %137 = vector.broadcast %135 : vector<1x384xf32> to vector<2x384xf32>
    %138 = arith.mulf %136, %137 : vector<2x384xf32>
    %139 = arith.addf %133, %138 : vector<2x384xf32>
    %140 = vector.extract_strided_slice %88 {offsets = [0, 8], sizes = [2, 1], strides = [1, 1]} : vector<2x256xf32> to vector<2x1xf32>
    %141 = vector.extract_strided_slice %90 {offsets = [8, 0], sizes = [1, 384], strides = [1, 1]} : vector<10x384xf32> to vector<1x384xf32>
    %142 = vector.broadcast %140 : vector<2x1xf32> to vector<2x384xf32>
    %143 = vector.broadcast %141 : vector<1x384xf32> to vector<2x384xf32>
    %144 = arith.mulf %142, %143 : vector<2x384xf32>
    %145 = arith.addf %139, %144 : vector<2x384xf32>
    %146 = vector.extract_strided_slice %88 {offsets = [0, 9], sizes = [2, 1], strides = [1, 1]} : vector<2x256xf32> to vector<2x1xf32>
    %147 = vector.extract_strided_slice %90 {offsets = [9, 0], sizes = [1, 384], strides = [1, 1]} : vector<10x384xf32> to vector<1x384xf32>
    %148 = vector.broadcast %146 : vector<2x1xf32> to vector<2x384xf32>
    %149 = vector.broadcast %147 : vector<1x384xf32> to vector<2x384xf32>
    %150 = arith.mulf %148, %149 : vector<2x384xf32>
    %151 = arith.addf %145, %150 : vector<2x384xf32>
    %c0_28 = arith.constant 0 : index
    %c0_29 = arith.constant 0 : index
    %152 = vector.load %arg11[%c0_28, %c0_29] : memref<1x384xf32, #tpu.memory_space<vmem>>, vector<1x384xf32>
    %153 = vector.broadcast %152 : vector<1x384xf32> to vector<2x384xf32>
    %154 = arith.addf %151, %153 : vector<2x384xf32>
    %c0_30 = arith.constant 0 : index
    %c0_31 = arith.constant 0 : index
    %155 = vector.load %arg13[%c0_30, %c0_31] : memref<2x384xf32, #tpu.memory_space<vmem>>, vector<2x384xf32>
    tpu.vector_store %arg13[%c0_30, %c0_31], %154 {strides = array<i32>} : memref<2x384xf32, #tpu.memory_space<vmem>>, vector<2x384xf32>,
    return
  }
  func.func @transform_0(%arg0: i32) -> (i32, i32) {
    %c0_i32 = arith.constant 0 : i32
    %c0_i32_0 = arith.constant 0 : i32
    %c0_i32_1 = arith.constant 0 : i32
    return %c0_i32, %c0_i32_0 : i32, i32
  }
  func.func @transform_1(%arg0: i32) -> (i32, i32) {
    %c0_i32 = arith.constant 0 : i32
    %c0_i32_0 = arith.constant 0 : i32
    %c0_i32_1 = arith.constant 0 : i32
    return %c0_i32, %c0_i32_0 : i32, i32
  }
  func.func @transform_2(%arg0: i32) -> (i32, i32) {
    %c0_i32 = arith.constant 0 : i32
    %c0_i32_0 = arith.constant 0 : i32
    %c0_i32_1 = arith.constant 0 : i32
    return %c0_i32, %c0_i32_0 : i32, i32
  }
  func.func @transform_3(%arg0: i32) -> (i32, i32) {
    %c0_i32 = arith.constant 0 : i32
    %c0_i32_0 = arith.constant 0 : i32
    %c0_i32_1 = arith.constant 0 : i32
    return %c0_i32, %c0_i32_0 : i32, i32
  }
  func.func @transform_4(%arg0: i32) -> (i32, i32) {
    %c0_i32 = arith.constant 0 : i32
    %c0_i32_0 = arith.constant 0 : i32
    %c0_i32_1 = arith.constant 0 : i32
    return %c0_i32, %c0_i32_0 : i32, i32
  }
  func.func @transform_5(%arg0: i32) -> (i32, i32) {
    %c0_i32 = arith.constant 0 : i32
    %c0_i32_0 = arith.constant 0 : i32
    %c0_i32_1 = arith.constant 0 : i32
    return %c0_i32, %c0_i32_0 : i32, i32
  }
  func.func @transform_6(%arg0: i32) -> (i32, i32) {
    %c0_i32 = arith.constant 0 : i32
    %c0_i32_0 = arith.constant 0 : i32
    %c0_i32_1 = arith.constant 0 : i32
    return %c0_i32, %c0_i32_0 : i32, i32
  }
  func.func @transform_7(%arg0: i32) -> (i32, i32) {
    %c0_i32 = arith.constant 0 : i32
    %c0_i32_0 = arith.constant 0 : i32
    %c0_i32_1 = arith.constant 0 : i32
    return %c0_i32, %c0_i32_0 : i32, i32
  }
  func.func @transform_8(%arg0: i32) -> (i32, i32) {
    %c0_i32 = arith.constant 0 : i32
    %c0_i32_0 = arith.constant 0 : i32
    %c0_i32_1 = arith.constant 0 : i32
    return %c0_i32, %c0_i32_0 : i32, i32
  }
  func.func @transform_9(%arg0: i32) -> (i32, i32) {
    %c0_i32 = arith.constant 0 : i32
    %c0_i32_0 = arith.constant 0 : i32
    %c0_i32_1 = arith.constant 0 : i32
    return %c0_i32, %c0_i32_0 : i32, i32
  }
  func.func @transform_10(%arg0: i32) -> (i32, i32) {
    %c0_i32 = arith.constant 0 : i32
    %c0_i32_0 = arith.constant 0 : i32
    %c0_i32_1 = arith.constant 0 : i32
    return %c0_i32, %c0_i32_0 : i32, i32
  }
  func.func @transform_11(%arg0: i32) -> (i32, i32) {
    %c0_i32 = arith.constant 0 : i32
    %c0_i32_0 = arith.constant 0 : i32
    %c0_i32_1 = arith.constant 0 : i32
    return %c0_i32, %c0_i32_0 : i32, i32
  }
  func.func @transform_12(%arg0: i32) -> (i32, i32) {
    %c0_i32 = arith.constant 0 : i32
    %c0_i32_0 = arith.constant 0 : i32
    %c0_i32_1 = arith.constant 0 : i32
    return %c0_i32, %c0_i32_0 : i32, i32
  }
}

</mosaic_0001>

<bundles_post_ra>
// kernel: poco_forward.1
= control target key start
LH: loop header
LB: loop body
LE: loop exit
PB: predicated region body
PF: predicated region fallthrough
CT: control target
= control target key end

     0   :  { %18 = vsyncpa [#allocation3], 0  ;;  %s1788_s0 = inlined_call_operand.hbm [shape: f32[96,16], index: 0, kind: input, shape index: {}]   ;;  %s1789_s1 = inlined_call_operand.vmem [shape: f32[2,10], index: 1, kind: input, shape index: {}]   ;;  %s1790_s2 = inlined_call_operand.vmem [shape: bf16[16,128], index: 2, kind: input, shape index: {}]   ;;  %s1791_s3 = inlined_call_operand.vmem [shape: f32[1,128], index: 3, kind: input, shape index: {}]   ;;  %s1792_s4 = inlined_call_operand.hbm [shape: bf16[128,256], index: 4, kind: input, shape index: {}]   ;;  %s1793_s5 = inlined_call_operand.hbm [shape: f32[10,256], index: 5, kind: input, shape index: {}]   ;;  %s1794_s6 = inlined_call_operand.hbm [shape: f32[1,256], index: 6, kind: input, shape index: {}]   ;;  %s1795_s7 = inlined_call_operand.hbm [shape: bf16[256,256], index: 7, kind: input, shape index: {}]   ;;  %s1796_s8 = inlined_call_operand.hbm [shape: f32[1,256], index: 8, kind: input, shape index: {}]   ;;  %s1797_s9 = inlined_call_operand.hbm [shape: f32[10,384], index: 9, kind: input, shape index: {}]   ;;  %s1798_s10 = inlined_call_operand.vmem [shape: f32[1,384], index: 10, kind: input, shape index: {}]   ;;  %s1799_s11 = inlined_call_operand.vmem [shape: f32[2,256], index: 11, kind: output, shape index: {0}]   ;;  %s1800_s12 = inlined_call_operand.vmem [shape: f32[2,384], index: 12, kind: output, shape index: {1}]  }
   0x1   :  { %19 = vsyncpa [#allocation5], 0 }
   0x2   :  { %20 = vsyncpa [#allocation8], 0 }
   0x3   :  { %21 = vsyncpa [#allocation11], 0  ;;  %s1511_s21 = smov [#allocation4]   ;;  %s1512_s23 = smov [#allocation7]  }
   0x4   :  { %s45_s22 = sshll.u32 %s1511_s21, 4  ;;  %s70_s24 = sshll.u32 %s1512_s23, 4  ;;  %s46_s22 = int_to_ptr.vmem [resolvable:$true] %s45_s22  ;;  %s71_s24 = int_to_ptr.vmem [resolvable:$true] %s70_s24 }
   0x5   :  { %s1371_s25 = scalar_lea.vmem %s46_s22, 2048  ;;  %p1376_p1 = scmp.lt.s32.totalorder %s46_s22, %s46_s22 }
   0x6   :  { %p1372_p0 = scmp.ne.s32.totalorder %s46_s22, %s1371_s25  ;;  %p1377_p2 = scmp.lt.s32.totalorder %s1371_s25, %s1371_s25 }
   0x8   :  { %p1378_p3 = por %p1377_p2, %p1376_p1 }
   0xa   :  { %p1379_p4 = pnand %p1378_p3, %p1372_p0 }
   0xc   :  { %1382 = shalt.err (!%p1379_p4)
}
   0xd   :  { %s1513_s26 = smov 128   ;;  %s1514_s27 = smov 8  }
   0xe   :  { %51 = dma.hbm_to_vmem [thread:$0]  %s1792_s4, 2048, %s46_s22, [#allocation5], %s1513_s26, %s1513_s26, %s1514_s27  }
   0xf   :  { %s1391_s30 = scalar_lea.vmem %s71_s24, 32  ;;  %p1396_p6 = scmp.lt.s32.totalorder %s71_s24, %s71_s24 }
  0x10   :  { %p1392_p5 = scmp.ne.s32.totalorder %s71_s24, %s1391_s30  ;;  %p1397_p7 = scmp.lt.s32.totalorder %s1391_s30, %s1391_s30 }
  0x12   :  { %p1398_p8 = por %p1397_p7, %p1396_p6 }
  0x14   :  { %p1399_p9 = pnand %p1398_p8, %p1392_p5 }
  0x16   :  { %1402 = shalt.err (!%p1399_p9)
}
  0x17   :  { %73 = dma.hbm_to_vmem [thread:$0]  %s1794_s6, 32, %s71_s24, [#allocation8]  }
  0x18   :  { %s1515_s15 = smov [#allocation10]   ;;  %s1516_s17 = smov [#allocation2]  }
  0x19   :  { %s92_s16 = sshll.u32 %s1515_s15, 4  ;;  %s27_s18 = sshll.u32 %s1516_s17, 4  ;;  %s93_s16 = int_to_ptr.vmem [resolvable:$true] %s92_s16  ;;  %s28_s18 = int_to_ptr.vmem [resolvable:$true] %s27_s18 }
  0x1a   :  { %s1411_s19 = scalar_lea.vmem %s93_s16, 32  ;;  %p1416_p11 = scmp.lt.s32.totalorder %s93_s16, %s93_s16 }
  0x1b   :  { %p1412_p10 = scmp.ne.s32.totalorder %s93_s16, %s1411_s19  ;;  %p1417_p12 = scmp.lt.s32.totalorder %s1411_s19, %s1411_s19 }
  0x1d   :  { %p1418_p13 = por %p1417_p12, %p1416_p11 }
  0x1f   :  { %p1419_p0 = pnand %p1418_p13, %p1412_p10 }
  0x21   :  { %1422 = shalt.err (!%p1419_p0)
}
  0x22   :  { %95 = dma.hbm_to_vmem [thread:$0]  %s1796_s8, 32, %s93_s16, [#allocation11]  }
  0x23   :  { %s1431_s21 = scalar_lea.vmem %s28_s18, 1536  ;;  %p1436_p2 = scmp.lt.s32.totalorder %s28_s18, %s28_s18 }
  0x24   :  { %p1432_p1 = scmp.ne.s32.totalorder %s28_s18, %s1431_s21  ;;  %p1437_p3 = scmp.lt.s32.totalorder %s1431_s21, %s1431_s21 }
  0x26   :  { %p1438_p4 = por %p1437_p3, %p1436_p2 }
  0x28   :  { %p1439_p5 = pnand %p1438_p4, %p1432_p1 }
  0x2a   :  { %1442 = shalt.err (!%p1439_p5)
}
  0x2b   :  { %33 = dma.hbm_to_vmem [thread:$0]  %s1788_s0, 1536, %s28_s18, [#allocation3], %s1513_s26, %s1513_s26, %s1514_s27  }
  0x2c   :  { %s1517_s23 = smov [#allocation6]  }
  0x2d   :  { %s57_s24 = sshll.u32 %s1517_s23, 4  ;;  %s58_s24 = int_to_ptr.vmem [resolvable:$true] %s57_s24 }
  0x2e   :  { %s1451_s25 = scalar_lea.vmem %s58_s24, 512  ;;  %p1456_p7 = scmp.lt.s32.totalorder %s58_s24, %s58_s24 }
  0x2f   :  { %p1452_p6 = scmp.ne.s32.totalorder %s58_s24, %s1451_s25  ;;  %p1457_p8 = scmp.lt.s32.totalorder %s1451_s25, %s1451_s25 }
  0x31   :  { %p1458_p9 = por %p1457_p8, %p1456_p7 }
  0x33   :  { %p1459_p10 = pnand %p1458_p9, %p1452_p6 }
  0x35   :  { %1462 = shalt.err (!%p1459_p10)
}
  0x36   :  { %s1518_s8 = smov 256   ;;  %s1519_s28 = smov 16  }
  0x37   :  { %63 = dma.hbm_to_vmem [thread:$0]  %s1793_s5, 512, %s58_s24, [#allocation5], %s1518_s8, %s1518_s8, %s1519_s28  }
  0x38   :  { %s1520_s13 = smov [#allocation9]   ;;  %s1521_s0 = smov [#allocation12]  }
  0x39   :  { %s79_s14 = sshll.u32 %s1520_s13, 4  ;;  %s101_s15 = sshll.u32 %s1521_s0, 4  ;;  %s80_s14 = int_to_ptr.vmem [resolvable:$true] %s79_s14  ;;  %s102_s15 = int_to_ptr.vmem [resolvable:$true] %s101_s15 }
  0x3a   :  { %s1471_s16 = scalar_lea.vmem %s80_s14, 4096  ;;  %p1476_p12 = scmp.lt.s32.totalorder %s80_s14, %s80_s14 }
  0x3b   :  { %p1472_p11 = scmp.ne.s32.totalorder %s80_s14, %s1471_s16  ;;  %p1477_p13 = scmp.lt.s32.totalorder %s1471_s16, %s1471_s16 }
  0x3d   :  { %p1478_p0 = por %p1477_p13, %p1476_p12 }
  0x3f   :  { %p1479_p1 = pnand %p1478_p0, %p1472_p11 }
  0x41   :  { %1482 = shalt.err (!%p1479_p1)
}
  0x42   :  { %85 = dma.hbm_to_vmem [thread:$0]  %s1795_s7, 4096, %s80_s14, [#allocation8], %s1513_s26, %s1513_s26, %s1514_s27  }
  0x43   :  { %s1491_s5 = scalar_lea.vmem %s102_s15, 768  ;;  %p1496_p3 = scmp.lt.s32.totalorder %s102_s15, %s102_s15 }
  0x44   :  { %p1492_p2 = scmp.ne.s32.totalorder %s102_s15, %s1491_s5  ;;  %p1497_p4 = scmp.lt.s32.totalorder %s1491_s5, %s1491_s5 }
  0x46   :  { %p1498_p5 = por %p1497_p4, %p1496_p3 }
  0x48   :  { %p1499_p6 = pnand %p1498_p5, %p1492_p2 }
  0x4a   :  { %1502 = shalt.err (!%p1499_p6)
}
  0x4b   :  { %s1522_s19 = smov 384   ;;  %s1523_s4 = smov 24  }
  0x4c   :  { %107 = dma.hbm_to_vmem [thread:$0]  %s1797_s9, 768, %s102_s15, [#allocation11], %s1522_s19, %s1522_s19, %s1523_s4  }
  0x4d   :  { %1503 = dma.done.wait [#allocation3], 1536  }
  0x4e   :  { %1504 = vsyncadd [#allocation3], 4294965760 }
  0x4f   :  { %1505 = dma.done.wait [#allocation5], 2560  }
  0x50   :  { %1506 = vsyncadd [#allocation5], 4294964736 }
  0x51   :  { %1507 = dma.done.wait [#allocation8], 4128  }
  0x52   :  { %1508 = vsyncadd [#allocation8], 4294963168 }
  0x53   :  { %1509 = dma.done.wait [#allocation11], 800  }
  0x54   :  { %1510 = vsyncadd [#allocation11], 4294966496  ;;  %v1290_v0 = vld [vmem:[%s1790_s2] sm:$0xff]   ;;  %v133_v2 = vld [vmem:[#allocation2 + $0x8] sm:$0xff]  ;;  %vm165_vm0 = vcmask 130048   ;;  %v1524_v35 = vmov 0  }
  0x55   :  { %v132_v1 = vld [vmem:[#allocation2] sm:$0xff]  ;;  %v134_v3 = vld [vmem:[#allocation2 + $0x10] sm:$0xff]  ;;  %1231 = vmatprep.subr.bf16.mxu1 %v1290_v0  ;;  %v135_v5 = vld [vmem:[#allocation2 + $0x18] sm:$0xff]  ;;  %1269 = vset.pattern.permute.xlu0 %v1524_v35  ;;  %v1525_v37 = vmov 2   ;;  %v1526_v42 = vmov 1   ;;  %v1527_v44 = vmov 3  }
  0x56   :  { %v144_v4 = vpack.c.bf16 %v133_v2, %v132_v1  ;;  %v136_v6 = vld [vmem:[#allocation2 + $0x20] sm:$0xff]  ;;  %v137_v7 = vld [vmem:[#allocation2 + $0x28] sm:$0xff]  ;;  %1232 = vmatpush3.bf16.msra.mxu1 %v1290_v0  ;;  %v145_v8 = vpack.c.bf16 %v135_v5, %v134_v3  ;;  %v138_v10 = vld [vmem:[#allocation2 + $0x30] sm:$0xff]  ;;  %1271 = vset.pattern.permute.xlu1 %v1525_v37  ;;  %v1528_v47 = vmov 5   ;;  %v1529_v48 = vmov 4  }
  0x57   :  { %v146_v9 = vpack.c.bf16 %v137_v7, %v136_v6  ;;  %v139_v11 = vld [vmem:[#allocation2 + $0x38] sm:$0xff]  ;;  %v140_v12 = vld [vmem:[#allocation2 + $0x40] sm:$0xff]  ;;  %v141_v13 = vld [vmem:[#allocation2 + $0x48] sm:$0xff]  ;;  %v1530_v51 = vmov 8   ;;  %v1531_v52 = vmov 6   ;;  %v1532_v55 = vmov 7  }
  0x58   :  { %1233 = vmatprep.mubr.msk.bf16.mxu1 %vm165_vm0, %v144_v4  ;;  %v147_v14 = vpack.c.bf16 %v139_v11, %v138_v10  ;;  %v148_v15 = vpack.c.bf16 %v141_v13, %v140_v12  ;;  %v142_v16 = vld [vmem:[#allocation2 + $0x50] sm:$0xff]  ;;  %v143_v17 = vld [vmem:[#allocation2 + $0x58] sm:$0xff]  ;;  %v1296_v21 = vld [vmem:[#allocation4 + $0x64] ss:$8 sps:$4 sm:$0xff]   ;;  %v1533_v59 = vmov 9   ;;  %vm344_vm1 = vcmask 1041409  }
  0x59   :  { %1234 = vmatmul.mubr.msk.bf16.vlgmr.msra.gmra.mxu1 %vm165_vm0, %v145_v8  ;;  %v149_v18 = vpack.c.bf16 %v143_v17, %v142_v16  ;;  %v1293_v19 = vld [vmem:[#allocation4 + $0x74] ss:$8 sps:$4 sm:$0xff]   ;;  %v1291_v20 = vld [vmem:[#allocation4 + $0x70] ss:$8 sps:$4 sm:$0xff]   ;;  %v1294_v22 = vld [vmem:[#allocation4 + $0x60] ss:$8 sps:$4 sm:$0xff]  }
  0x5a   :  { %1237 = vmatprep.mubr.msk.bf16.mxu1 %vm165_vm0, %v146_v9  ;;  %428 = vmatprep.subr.bf16.mxu1 %v1293_v19  ;;  %v1299_v23 = vld [vmem:[#allocation4 + $0x54] ss:$8 sps:$4 sm:$0xff]   ;;  %v1297_v24 = vld [vmem:[#allocation4 + $0x50] ss:$8 sps:$4 sm:$0xff]   ;;  %v1302_v25 = vld [vmem:[#allocation4 + $0x44] ss:$8 sps:$4 sm:$0xff]  }
  0x5b   :  { %429 = vmatpush1.bf16.msra.mxu1 %v1291_v20  ;;  %v1300_v26 = vld [vmem:[#allocation4 + $0x40] ss:$8 sps:$4 sm:$0xff]   ;;  %v1305_v27 = vld [vmem:[#allocation4 + $0x34] ss:$8 sps:$4 sm:$0xff]   ;;  %v1303_v28 = vld [vmem:[#allocation4 + $0x30] ss:$8 sps:$4 sm:$0xff]  }
  0x5c   :  { %430 = vmatprep.subr.bf16.mxu1 %v1296_v21  ;;  %v1308_v29 = vld [vmem:[#allocation4 + $0x24] ss:$8 sps:$4 sm:$0xff]   ;;  %v1306_v30 = vld [vmem:[#allocation4 + $0x20] ss:$8 sps:$4 sm:$0xff]   ;;  %v1311_v31 = vld [vmem:[#allocation4 + $0x14] ss:$8 sps:$4 sm:$0xff]  }
  0x5d   :  { %v1309_v32 = vld [vmem:[#allocation4 + $0x10] ss:$8 sps:$4 sm:$0xff]   ;;  %v1314_v33 = vld [vmem:[#allocation4 + $0x4] ss:$8 sps:$4 sm:$0xff]   ;;  %v1312_v34 = vld [vmem:[#allocation4] ss:$8 sps:$4 sm:$0xff]  }
  0x5e   :  { %v320_v36 = vld [vmem:[%s1789_s1] sm:$0x3]  ;;  %v1317_v39 = vld [vmem:[#allocation9 + $0x70] ss:$8 sps:$4 sm:$0xff]   ;;  %v1318_v40 = vld [vmem:[#allocation9 + $0x64] ss:$8 sps:$4 sm:$0xff]  }
  0x5f   :  { %431 = vmatpush1.bf16.msra.mxu1 %v1294_v22  ;;  %327 = vperm.xlu0 %1269, %v320_v36   ;;  %v1315_v38 = vld [vmem:[#allocation9 + $0x74] ss:$8 sps:$4 sm:$0xff]   ;;  %v1320_v41 = vld [vmem:[#allocation9 + $0x60] ss:$8 sps:$4 sm:$0xff]   ;;  %v1323_v45 = vld [vmem:[#allocation9 + $0x50] ss:$8 sps:$4 sm:$0xff]  }
  0x60   :  { %432 = vmatprep.subr.bf16.mxu1 %v1299_v23  ;;  %486 = vperm.xlu1 %1271, %v320_v36   ;;  %v1321_v43 = vld [vmem:[#allocation9 + $0x54] ss:$8 sps:$4 sm:$0xff]   ;;  %v1324_v46 = vld [vmem:[#allocation9 + $0x44] ss:$8 sps:$4 sm:$0xff]   ;;  %v1326_v49 = vld [vmem:[#allocation9 + $0x40] ss:$8 sps:$4 sm:$0xff]  }
  0x61   :  { %1238 = vmatmul.mubr.msk.bf16.gmra.mxu1 %vm165_vm0, %v147_v14  ;;  %835 = vmatprep.subr.bf16.mxu0 %v1315_v38  ;;  %v1327_v50 = vld [vmem:[#allocation9 + $0x34] ss:$8 sps:$4 sm:$0xff]   ;;  %v1329_v53 = vld [vmem:[#allocation9 + $0x30] ss:$8 sps:$4 sm:$0xff]   ;;  %v1330_v54 = vld [vmem:[#allocation9 + $0x24] ss:$8 sps:$4 sm:$0xff]  }
  0x62   :  { %1241 = vmatprep.mubr.msk.bf16.mxu1 %vm165_vm0, %v148_v15  ;;  %836 = vmatpush1.bf16.msra.mxu0 %v1317_v39  ;;  %v1332_v56 = vld [vmem:[#allocation9 + $0x20] ss:$8 sps:$4 sm:$0xff]   ;;  %v1333_v57 = vld [vmem:[#allocation9 + $0x14] ss:$8 sps:$4 sm:$0xff]   ;;  %v1335_v58 = vld [vmem:[#allocation9 + $0x10] ss:$8 sps:$4 sm:$0xff]  }
  0x63   :  { %433 = vmatpush1.bf16.msra.mxu1 %v1297_v24  ;;  %1270 = vset.pattern.permute.xlu0 %v1526_v42  ;;  %v1336_v60 = vld [vmem:[#allocation9 + $0x4] ss:$8 sps:$4 sm:$0xff]   ;;  %v1338_v61 = vld [vmem:[#allocation9] ss:$8 sps:$4 sm:$0xff]   ;;  %v1339_v62 = vld [vmem:[#allocation9 + $0xf4] ss:$8 sps:$4 sm:$0xff]  }
  0x64   :  { %434 = vmatprep.subr.bf16.mxu1 %v1302_v25  ;;  %837 = vmatprep.subr.bf16.mxu0 %v1318_v40  ;;  %v1341_v63 = vld [vmem:[#allocation9 + $0xf0] ss:$8 sps:$4 sm:$0xff]   ;;  %v1167_v2 = vld [vmem:[%s1791_s3] ss:$0 sm:$0xff] }
  0x65   :  { %1272 = vset.pattern.permute.xlu1 %v1527_v44  ;;  %470 = vperm.xlu0 %1270, %v320_v36  }
  0x66   :  { %502 = vperm.xlu1 %1272, %v320_v36   ;;  %838 = vmatpush1.bf16.msra.mxu0 %v1320_v41 }
  0x67   :  { %435 = vmatpush1.bf16.msra.mxu1 %v1300_v26  ;;  %839 = vmatprep.subr.bf16.mxu0 %v1321_v43 }
  0x68   :  { %436 = vmatprep.subr.bf16.mxu1 %v1305_v27 }
  0x69   :  { %1242 = vmatmul.mubr.msk.bf16.gmra.mxu1 %vm165_vm0, %v149_v18  ;;  %1274 = vset.pattern.permute.xlu0 %v1528_v47 }
  0x6a   :  { %460 = vmatprep.mubr.bf16.mxu1 %v1524_v35  ;;  %1273 = vset.pattern.permute.xlu1 %v1529_v48 }
  0x6b   :  { %437 = vmatpush1.bf16.msra.mxu1 %v1303_v28  ;;  %534 = vperm.xlu0 %1274, %v320_v36  }
  0x6c   :  { %438 = vmatprep.subr.bf16.mxu1 %v1308_v29  ;;  %518 = vperm.xlu1 %1273, %v320_v36  }
  0x6d   :  { %840 = vmatpush1.bf16.msra.mxu0 %v1323_v45 }
  0x6e   :  { %841 = vmatprep.subr.bf16.mxu0 %v1324_v46 }
  0x6f   :  { %439 = vmatpush1.bf16.msra.mxu1 %v1306_v30  ;;  %1277 = vset.pattern.permute.xlu0 %v1530_v51 }
  0x70   :  { %440 = vmatprep.subr.bf16.mxu1 %v1311_v31  ;;  %1275 = vset.pattern.permute.xlu1 %v1531_v52 }
  0x71   :  { %582 = vperm.xlu0 %1277, %v320_v36   ;;  %550 = vperm.xlu1 %1275, %v320_v36  }
  0x72   :  { %842 = vmatpush1.bf16.msra.mxu0 %v1326_v49 }
  0x73   :  { %441 = vmatpush1.bf16.msra.mxu1 %v1309_v32  ;;  %843 = vmatprep.subr.bf16.mxu0 %v1327_v50 }
  0x74   :  { %442 = vmatprep.subr.bf16.mxu1 %v1314_v33 }
  0x75   :  { %1280 = vset.pattern.permute.xlu0 %v1526_v42  ;;  %1276 = vset.pattern.permute.xlu1 %v1532_v55 }
  0x76   :  { %844 = vmatpush1.bf16.msra.mxu0 %v1329_v53  ;;  %566 = vperm.xlu1 %1276, %v320_v36  }
  0x77   :  { %443 = vmatpush1.bf16.msra.mxu1 %v1312_v34  ;;  %845 = vmatprep.subr.bf16.mxu0 %v1330_v54 }
  0x7a   :  { %846 = vmatpush1.bf16.msra.mxu0 %v1332_v56  ;;  %1278 = vset.pattern.permute.xlu1 %v1533_v59 }
  0x7b   :  { %847 = vmatprep.subr.bf16.mxu0 %v1333_v57  ;;  %598 = vperm.xlu1 %1278, %v320_v36  }
  0x7e   :  { %848 = vmatpush1.bf16.msra.mxu0 %v1335_v58 }
  0x7f   :  { %849 = vmatprep.subr.bf16.mxu0 %v1336_v60  ;;  %1279 = vset.pattern.permute.xlu1 %v1524_v35 }
  0x82   :  { %850 = vmatpush1.bf16.msra.mxu0 %v1338_v61 }
  0x83   :  { %851 = vmatprep.subr.bf16.mxu0 %v1339_v62 }
  0x86   :  { %852 = vmatpush2.bf16.msra.mxu0 %v1341_v63 }
 0x119   :  { %v1235_v0 = vpop.f32.mrf.mxu1 }
 0x11a   :  { %v227_v6 = vadd.f32 %v1235_v0, %v1167_v2 }
 0x11b   :  { %v218_v1 = vpop.f32.mrf.mxu1 }
 0x11c   :  { %v219_v4 = vadd.f32 %v1167_v2, %v218_v1  ;;  %v267_v13 = vmax.f32 %v227_v6, 0.0 }
 0x11d   :  { %v1236_v3 = vpop.f32.mrf.mxu1 }
 0x11e   :  { %v265_v9 = vmax.f32 %v219_v4, 0.0  ;;  %v230_v10 = vadd.f32 %v1236_v3, %v1167_v2 }
 0x11f   :  { %v221_v5 = vpop.f32.mrf.mxu1 }
 0x120   :  { %v222_v7 = vadd.f32 %v1167_v2, %v221_v5  ;;  %v268_v17 = vmax.f32 %v230_v10, 0.0 }
 0x121   :  { %v1239_v8 = vpop.f32.mrf.mxu1 }
 0x122   :  { %v266_v11 = vmax.f32 %v222_v7, 0.0  ;;  %v243_v25 = vadd.f32 %v1239_v8, %v1167_v2 }
 0x123   :  { %v234_v12 = vpop.f32.mrf.mxu1 }
 0x124   :  { %v277_v14 = vadd.f32 %v266_v11, %v265_v9  ;;  %v235_v15 = vadd.f32 %v1167_v2, %v234_v12  ;;  %v271_v33 = vmax.f32 %v243_v25, 0.0  ;;  %v1342_v11 = vld [vmem:[#allocation9 + $0xe4] ss:$8 sps:$4 sm:$0xff]   ;;  %v1344_v12 = vld [vmem:[#allocation9 + $0xe0] ss:$8 sps:$4 sm:$0xff]   ;;  %v487_v25 = vpop.permute.xlu1 %486 }
 0x125   :  { %v1240_v16 = vpop.f32.mrf.mxu1  ;;  %853 = vmatprep.subr.bf16.mxu0 %v1342_v11 }
 0x126   :  { %v278_v18 = vadd.f32 %v277_v14, %v267_v13  ;;  %v269_v20 = vmax.f32 %v235_v15, 0.0  ;;  %v246_v22 = vadd.f32 %v1240_v16, %v1167_v2  ;;  %854 = vmatpush2.bf16.msra.mxu0 %v1344_v12  ;;  %v1345_v13 = vld [vmem:[#allocation9 + $0xd4] ss:$8 sps:$4 sm:$0xff]   ;;  %v1347_v14 = vld [vmem:[#allocation9 + $0xd0] ss:$8 sps:$4 sm:$0xff]  }
 0x127   :  { %v237_v19 = vpop.f32.mrf.mxu1  ;;  %855 = vmatprep.subr.bf16.mxu0 %v1345_v13  ;;  %v1348_v15 = vld [vmem:[#allocation9 + $0xc4] ss:$8 sps:$4 sm:$0xff]   ;;  %v1350_v16 = vld [vmem:[#allocation9 + $0xc0] ss:$8 sps:$4 sm:$0xff]  }
 0x128   :  { %v279_v21 = vadd.f32 %v278_v18, %v268_v17  ;;  %v238_v23 = vadd.f32 %v1167_v2, %v237_v19  ;;  %v272_v29 = vmax.f32 %v246_v22, 0.0  ;;  %v1351_v17 = vld [vmem:[#allocation9 + $0xb4] ss:$8 sps:$4 sm:$0xff]   ;;  %v1353_v18 = vld [vmem:[#allocation9 + $0xb0] ss:$8 sps:$4 sm:$0xff]  }
 0x129   :  { %v1243_v24 = vpop.f32.mrf.mxu1  ;;  %v1354_v19 = vld [vmem:[#allocation9 + $0xa4] ss:$8 sps:$4 sm:$0xff]   ;;  %v1359_v22 = vld [vmem:[#allocation9 + $0x90] ss:$8 sps:$4 sm:$0xff]  }
 0x12a   :  { %v280_v26 = vadd.f32 %v279_v21, %v269_v20  ;;  %v270_v27 = vmax.f32 %v238_v23, 0.0  ;;  %v288_v38 = vadd.f32 %v272_v29, %v271_v33  ;;  %v259_v40 = vadd.f32 %v1243_v24, %v1167_v2  ;;  %856 = vmatpush2.bf16.msra.mxu0 %v1347_v14  ;;  %v1356_v20 = vld [vmem:[#allocation9 + $0xa0] ss:$8 sps:$4 sm:$0xff]   ;;  %v1357_v21 = vld [vmem:[#allocation9 + $0x94] ss:$8 sps:$4 sm:$0xff]  }
 0x12b   :  { %v250_v28 = vpop.f32.mrf.mxu1  ;;  %857 = vmatprep.subr.bf16.mxu0 %v1348_v15  ;;  %v1360_v23 = vld [vmem:[#allocation9 + $0x84] ss:$8 sps:$4 sm:$0xff]   ;;  %v1362_v24 = vld [vmem:[#allocation9 + $0x80] ss:$8 sps:$4 sm:$0xff]  }
 0x12c   :  { %v281_v30 = vadd.f32 %v280_v26, %v270_v27  ;;  %v251_v31 = vadd.f32 %v1167_v2, %v250_v28  ;;  %v275_v49 = vmax.f32 %v259_v40, 0.0  ;;  %v330_v26 = vlaneseq  ;;  %v503_v28 = vpop.permute.xlu1 %502 }
 0x12d   :  { %v1244_v32 = vpop.f32.mrf.mxu1 }
 0x12e   :  { %v282_v34 = vrot.slane %v281_v30, 4  ;;  %v273_v35 = vmax.f32 %v251_v31, 0.0  ;;  %v262_v45 = vadd.f32 %v1244_v32, %v1167_v2  ;;  %858 = vmatpush2.bf16.msra.mxu0 %v1350_v16  ;;  %v1656_v27 = vshrl.u32 %v330_v26, 7  ;;  %v321_v32 = vld [vmem:[#allocation6] sm:$0xff] }
 0x12f   :  { %v253_v36 = vpop.f32.mrf.mxu1  ;;  %859 = vmatprep.subr.bf16.mxu0 %v1351_v17 }
 0x130   :  { %v283_v39 = vadd.f32 %v282_v34, %v281_v30  ;;  %v254_v41 = vadd.f32 %v1167_v2, %v253_v36  ;;  %v289_v43 = vadd.f32 %v288_v38, %v273_v35  ;;  %v276_v54 = vmax.f32 %v262_v45, 0.0  ;;  %v328_v30 = vpop.permute.xlu0 %327  ;;  %v519_v35 = vpop.permute.xlu1 %518  ;;  %v322_v38 = vld [vmem:[#allocation6 + $0x8] sm:$0xff] }
 0x131   :  { %v1659_v29 = vsub.s32 0, %v1656_v27  ;;  %v1662_v31 = vsub.s32 1, %v1656_v27  ;;  %v1666_v34 = vsub.s32 2, %v1656_v27 }
 0x132   :  { %v284_v42 = vrot.slane %v283_v39, 2  ;;  %v274_v46 = vmax.f32 %v254_v41, 0.0  ;;  %860 = vmatpush2.bf16.msra.mxu0 %v1353_v18 }
 0x133   :  { %861 = vmatprep.subr.bf16.mxu0 %v1354_v19  ;;  %v333_v33 = vrot.slane %v321_v32, %v1659_v29  ;;  %v476_v36 = vrot.slane %v321_v32, %v1662_v31  ;;  %v337_v40 = vrot.slane %v322_v38, %v1659_v29  ;;  %v492_v45 = vrot.slane %v321_v32, %v1666_v34 }
 0x134   :  { %v290_v50 = vadd.f32 %v289_v43, %v274_v46  ;;  %v285_v53 = vadd.f32 %v284_v42, %v283_v39  ;;  %v471_v39 = vpop.permute.xlu0 %470  ;;  %v1671_v42 = vsub.s32 3, %v1656_v27  ;;  %v480_v43 = vrot.slane %v322_v38, %v1662_v31 }
 0x135   :  { %v338_v41 = vmul.f32 %v333_v33, %v328_v30  ;;  %v481_v46 = vmul.f32 %v476_v36, %v471_v39  ;;  %v324_v33 = vld [vmem:[#allocation6 + $0x18] sm:$0x3] }
 0x136   :  { %v291_v56 = vadd.f32 %v290_v50, %v275_v49  ;;  %v286_v58 = vrot.slane %v285_v53, 1  ;;  %862 = vmatpush2.bf16.msra.mxu0 %v1356_v20  ;;  %v1676_v49 = vsub.s32 4, %v1656_v27  ;;  %v1679_v50 = vsub.s32 5, %v1656_v27  ;;  %v323_v20 = vld [vmem:[#allocation6 + $0x10] sm:$0x3] }
 0x137   :  { %863 = vmatprep.subr.bf16.mxu0 %v1357_v21 }
 0x138   :  { %v292_v57 = vadd.f32 %v291_v56, %v276_v54  ;;  %v287_v62 = vadd.f32 %v286_v58, %v285_v53  ;;  %v496_v53 = vrot.slane %v322_v38, %v1666_v34  ;;  %v551_v56 = vpop.permute.xlu1 %550  ;;  %v508_v58 = vrot.slane %v321_v32, %v1671_v42 }
 0x139   :  { %v544_v14 = vrot.slane %v322_v38, %v1679_v50 }
 0x13a   :  { %v293_v60 = vrot.slane %v292_v57, 4  ;;  %v300_v1 = vmul.f32 0.020833334, %v287_v62  ;;  %864 = vmatpush2.bf16.msra.mxu0 %v1359_v22  ;;  %v497_v62 = vmul.f32 %v492_v45, %v487_v25  ;;  %v513_v11 = vmul.f32 %v508_v58, %v503_v28 }
 0x13b   :  { %865 = vmatprep.subr.bf16.mxu0 %v1360_v23 }
 0x13c   :  { %v294_v61 = vadd.f32 %v293_v60, %v292_v57  ;;  %v302_v5 = vpack.c.bf16 %v300_v1, %v300_v1  ;;  %v339_v57 = vmul.f32 %v337_v40, %v328_v30  ;;  %v482_v60 = vmul.f32 %v480_v43, %v471_v39  ;;  %v567_v19 = vpop.permute.xlu1 %566 }
 0x13d   :  { %v1685_v1 = vsub.s32 6, %v1656_v27  ;;  %v588_v40 = vrot.slane %v323_v20, %v1659_v29 }
 0x13e   :  { %v295_v63 = vrot.slane %v294_v61, 2  ;;  %v342_v2 = vunpack.c.l.b16 %v302_v5  ;;  %866 = vmatpush2.bf16.msra.mxu0 %v1362_v24 }
 0x13f   :  { %v556_v17 = vrot.slane %v321_v32, %v1685_v1  ;;  %v560_v26 = vrot.slane %v322_v38, %v1685_v1 }
 0x140   :  { %v296_v0 = vadd.f32 %v295_v63, %v294_v61  ;;  %v512_v63 = vrot.slane %v322_v38, %v1671_v42  ;;  %v599_v58 = vpop.permute.xlu1 %598 }
 0x142   :  { %v297_v3 = vrot.slane %v296_v0, 1  ;;  %v514_v15 = vmul.f32 %v512_v63, %v503_v28  ;;  %v613_v63 = vld [vmem:[#allocation7] sm:$0x3] }
 0x144   :  { %v298_v4 = vadd.f32 %v297_v3, %v296_v0  ;;  %v1688_v3 = vsub.s32 7, %v1656_v27 }
 0x146   :  { %v301_v6 = vmul.f32 0.020833334, %v298_v4  ;;  %v572_v18 = vrot.slane %v321_v32, %v1688_v3  ;;  %v576_v30 = vrot.slane %v322_v38, %v1688_v3 }
 0x148   :  { %v303_v7 = vpack.c.bf16 %v301_v6, %v301_v6  ;;  %v524_v6 = vrot.slane %v321_v32, %v1676_v49  ;;  %v577_v43 = vmul.f32 %v572_v18, %v567_v19 }
 0x14a   :  { %v343_v8 = vunpack.c.l.b16 %v303_v7  ;;  %v540_v7 = vrot.slane %v321_v32, %v1679_v50  ;;  %v529_v23 = vmul.f32 %v524_v6, %v519_v35 }
 0x14c   :  { %v345_v9 = vsel %vm344_vm1, %v343_v8, %v342_v2  ;;  %v498_v2 = vmul.f32 %v496_v53, %v487_v25  ;;  %v528_v8 = vrot.slane %v322_v38, %v1676_v49  ;;  %v592_v53 = vrot.slane %v324_v33, %v1659_v29 }
 0x14d   :  { %v346_v10 = vpack.c.b16 %v345_v9, %v345_v9 }
 0x14e   :  { %v530_v25 = vmul.f32 %v528_v8, %v519_v35  ;;  %v562_v35 = vmul.f32 %v560_v26, %v551_v56 }
 0x14f   :  { %461 = vmatmul.mubr.bf16.vlgmr.msra.gmra.mxu1 %v346_v10  ;;  %v535_v10 = vpop.permute.xlu0 %534 }
 0x150   :  { %v545_v24 = vmul.f32 %v540_v7, %v535_v10  ;;  %v546_v28 = vmul.f32 %v544_v14, %v535_v10 }
 0x153   :  { %v583_v32 = vpop.permute.xlu0 %582 }
 0x20f   :  { %v462_v54 = vpop.f32.mrf.mxu1 }
 0x210   :  { %v463_v61 = vadd.f32 %v462_v54, %v338_v41  ;;  %v561_v41 = vmul.f32 %v556_v17, %v551_v56  ;;  %v604_v54 = vrot.slane %v323_v20, %v1662_v31  ;;  %v622_v56 = vrot.slane %v613_v63, %v1662_v31 }
 0x211   :  { %v464_v0 = vpop.f32.mrf.mxu1 }
 0x212   :  { %v483_v4 = vadd.f32 %v481_v46, %v463_v61  ;;  %v465_v5 = vadd.f32 %v464_v0, %v339_v57  ;;  %v578_v57 = vmul.f32 %v576_v30, %v567_v19  ;;  %v593_v61 = vmul.f32 %v588_v40, %v583_v32  ;;  %v663_v19 = vld [vmem:[#allocation10] sm:$0x3] }
 0x213   :  { %v466_v9 = vpop.f32.mrf.mxu1  ;;  %v609_v6 = vmul.f32 %v604_v54, %v599_v58  ;;  %v668_v20 = vrot.slane %v663_v19, %v1659_v29 }
 0x214   :  { %v499_v12 = vadd.f32 %v497_v62, %v483_v4  ;;  %v484_v13 = vadd.f32 %v482_v60, %v465_v5  ;;  %v608_v62 = vrot.slane %v324_v33, %v1662_v31  ;;  %v594_v5 = vmul.f32 %v592_v53, %v583_v32 }
 0x215   :  { %v467_v16 = vpop.f32.mrf.mxu1  ;;  %v618_v9 = vrot.slane %v613_v63, %v1659_v29 }
 0x216   :  { %v500_v21 = vadd.f32 %v498_v2, %v484_v13  ;;  %v515_v22 = vadd.f32 %v513_v11, %v499_v12  ;;  %v610_v8 = vmul.f32 %v608_v62, %v599_v58 }
 0x218   :  { %v516_v36 = vadd.f32 %v514_v15, %v500_v21  ;;  %v531_v39 = vadd.f32 %v529_v23, %v515_v22  ;;  %v672_v21 = vrot.slane %v663_v19, %v1662_v31 }
 0x21a   :  { %v532_v45 = vadd.f32 %v530_v25, %v516_v36  ;;  %v547_v46 = vadd.f32 %v545_v24, %v531_v39 }
 0x21c   :  { %v548_v60 = vadd.f32 %v546_v28, %v532_v45  ;;  %v563_v38 = vadd.f32 %v561_v41, %v547_v46 }
 0x21e   :  { %v564_v0 = vadd.f32 %v562_v35, %v548_v60  ;;  %v579_v4 = vadd.f32 %v577_v43, %v563_v38 }
 0x220   :  { %v580_v7 = vadd.f32 %v578_v57, %v564_v0  ;;  %v595_v2 = vadd.f32 %v593_v61, %v579_v4 }
 0x222   :  { %v596_v10 = vadd.f32 %v594_v5, %v580_v7  ;;  %v611_v11 = vadd.f32 %v609_v6, %v595_v2 }
 0x224   :  { %v612_v12 = vadd.f32 %v610_v8, %v596_v10  ;;  %v625_v13 = vadd.f32 %v618_v9, %v611_v11 }
 0x226   :  { %v626_v14 = vadd.f32 %v622_v56, %v612_v12  ;;  %v627_v15 = vmax.f32 %v625_v13, 0.0 }
 0x228   :  { %v628_v16 = vmax.f32 %v626_v14, 0.0  ;;  %v629_v18 = vpack.c.bf16 %v627_v15, %v627_v15 }
 0x22a   :  { %v630_v17 = vpack.c.bf16 %v628_v16, %v628_v16 }
 0x22c   :  { %867 = vmatprep.mubr.bf16.mxu0 %v630_v17 }
 0x22d   :  { %868 = vmatmul.mubr.bf16.vlgmr.msra.gmra.mxu0 %v629_v18 }
 0x2ed   :  { %v869_v22 = vpop.f32.mrf.mxu0 }
 0x2ee   :  { %v870_v23 = vadd.f32 %v869_v22, %v668_v20 }
 0x2ef   :  { %v871_v24 = vpop.f32.mrf.mxu0 }
 0x2f0   :  { %v872_v25 = vadd.f32 %v871_v24, %v672_v21  ;;  %917 = vperm.xlu0 %1280, %v870_v23   ;;  %895 = vperm.xlu1 %1279, %v870_v23  }
 0x2f1   :  { %v873_v26 = vpop.f32.mrf.mxu0 }
 0x2f2   :  { %v878_v30 = vcombine.low %v870_v23, %v872_v25 }
 0x2f3   :  { %v874_v33 = vpop.f32.mrf.mxu0 }
 0x2f4   :  { %1223 = vst.sshfl [vmem:[%s1799_s11] sm:$0x33 pattern:$0x76325410] %v878_v30  ;;  %1283 = vset.pattern.permute.xlu0 %v1529_v48  ;;  %1281 = vset.pattern.permute.xlu1 %v1525_v37  ;;  %v1718_v37 = vld [vmem:[#allocation12] sm:$0xff]  ;;  %v1720_v48 = vld [vmem:[#allocation12 + $0x8] sm:$0xff] }
 0x2f5   :  { %983 = vperm.xlu0 %1283, %v870_v23   ;;  %939 = vperm.xlu1 %1281, %v870_v23   ;;  %v905_v39 = vrot.slane %v1720_v48, %v1659_v29  ;;  %v945_v40 = vrot.slane %v1718_v37, %v1666_v34  ;;  %v949_v41 = vrot.slane %v1720_v48, %v1666_v34 }
 0x2f6   :  { %v967_v60 = vrot.slane %v1718_v37, %v1671_v42  ;;  %v971_v62 = vrot.slane %v1720_v48, %v1671_v42  ;;  %v989_v4 = vrot.slane %v1718_v37, %v1676_v49  ;;  %v993_v7 = vrot.slane %v1720_v48, %v1676_v49 }
 0x2f7   :  { %v1011_v56 = vrot.slane %v1718_v37, %v1679_v50 }
 0x2f9   :  { %1286 = vset.pattern.permute.xlu0 %v1532_v55  ;;  %1282 = vset.pattern.permute.xlu1 %v1527_v44  ;;  %v1722_v44 = vld [vmem:[#allocation12 + $0x10] sm:$0xff] }
 0x2fa   :  { %1049 = vperm.xlu0 %1286, %v870_v23   ;;  %961 = vperm.xlu1 %1282, %v870_v23   ;;  %v909_v28 = vrot.slane %v1722_v44, %v1659_v29  ;;  %v953_v43 = vrot.slane %v1722_v44, %v1666_v34  ;;  %v975_v63 = vrot.slane %v1722_v44, %v1671_v42 }
 0x2fb   :  { %v997_v2 = vrot.slane %v1722_v44, %v1676_v49  ;;  %v1015_v42 = vrot.slane %v1720_v48, %v1679_v50  ;;  %v1019_v17 = vrot.slane %v1722_v44, %v1679_v50  ;;  %v1041_v50 = vrot.slane %v1722_v44, %v1685_v1 }
 0x2fe   :  { %1284 = vset.pattern.permute.xlu1 %v1528_v47  ;;  %1289 = vset.pattern.permute.xlu0 %v1533_v59  ;;  %v923_v47 = vrot.slane %v1718_v37, %v1662_v31 }
 0x2ff   :  { %1005 = vperm.xlu1 %1284, %v870_v23  }
 0x303   :  { %1285 = vset.pattern.permute.xlu1 %v1531_v52  ;;  %v901_v52 = vrot.slane %v1718_v37, %v1659_v29 }
 0x304   :  { %1027 = vperm.xlu1 %1285, %v870_v23  }
 0x308   :  { %1287 = vset.pattern.permute.xlu1 %v1530_v51  ;;  %v927_v51 = vrot.slane %v1720_v48, %v1662_v31 }
 0x309   :  { %1071 = vperm.xlu1 %1287, %v870_v23  }
 0x30d   :  { %1288 = vset.pattern.permute.xlu1 %v1533_v59  ;;  %v931_v59 = vrot.slane %v1722_v44, %v1662_v31 }
 0x30e   :  { %1093 = vperm.xlu1 %1288, %v870_v23   ;;  %v1033_v23 = vrot.slane %v1718_v37, %v1685_v1 }
 0x36b   :  { %v896_v55 = vpop.permute.xlu1 %895  ;;  %v918_v36 = vpop.permute.xlu0 %917 }
 0x36c   :  { %v932_v32 = vmul.f32 %v923_v47, %v918_v36  ;;  %v910_v45 = vmul.f32 %v901_v52, %v896_v55  ;;  %v933_v53 = vmul.f32 %v927_v51, %v918_v36  ;;  %v934_v54 = vmul.f32 %v931_v59, %v918_v36  ;;  %v891_v51 = vld [vmem:[#allocation12 + $0x18] sm:$0x3]  ;;  %v892_v59 = vld [vmem:[#allocation12 + $0x20] sm:$0x3] }
 0x36d   :  { %v911_v35 = vmul.f32 %v905_v39, %v896_v55  ;;  %v912_v57 = vmul.f32 %v909_v28, %v896_v55  ;;  %v1037_v47 = vrot.slane %v1720_v48, %v1685_v1  ;;  %v1055_v52 = vrot.slane %v1718_v37, %v1688_v3 }
 0x36e   :  { %v935_v0 = vadd.f32 %v932_v32, %v910_v45  ;;  %v1059_v36 = vrot.slane %v1720_v48, %v1688_v3  ;;  %v1063_v39 = vrot.slane %v1722_v44, %v1688_v3  ;;  %v1081_v37 = vrot.slane %v892_v59, %v1659_v29 }
 0x36f   :  { %v936_v5 = vadd.f32 %v933_v53, %v911_v35  ;;  %v937_v6 = vadd.f32 %v934_v54, %v912_v57  ;;  %v1077_v54 = vrot.slane %v891_v51, %v1659_v29 }
 0x370   :  { %v940_v46 = vpop.permute.xlu1 %939  ;;  %v984_v9 = vpop.permute.xlu0 %983 }
 0x371   :  { %v954_v58 = vmul.f32 %v945_v40, %v940_v46  ;;  %v955_v38 = vmul.f32 %v949_v41, %v940_v46  ;;  %v956_v61 = vmul.f32 %v953_v43, %v940_v46  ;;  %v998_v18 = vmul.f32 %v989_v4, %v984_v9  ;;  %v893_v43 = vld [vmem:[#allocation12 + $0x28] sm:$0x3] }
 0x372   :  { %v999_v49 = vmul.f32 %v993_v7, %v984_v9  ;;  %v1000_v21 = vmul.f32 %v997_v2, %v984_v9  ;;  %v1085_v48 = vrot.slane %v893_v43, %v1659_v29  ;;  %v1114_v7 = vld [vmem:[%s1798_s10] sm:$0x7]  ;;  %v1103_v9 = vrot.slane %v892_v59, %v1662_v31 }
 0x373   :  { %v957_v10 = vadd.f32 %v954_v58, %v935_v0  ;;  %v958_v12 = vadd.f32 %v955_v38, %v936_v5  ;;  %v959_v13 = vadd.f32 %v956_v61, %v937_v6  ;;  %v1099_v61 = vrot.slane %v891_v51, %v1662_v31 }
 0x375   :  { %v962_v8 = vpop.permute.xlu1 %961  ;;  %v1050_v32 = vpop.permute.xlu0 %1049 }
 0x376   :  { %v976_v11 = vmul.f32 %v967_v60, %v962_v8  ;;  %v977_v14 = vmul.f32 %v971_v62, %v962_v8  ;;  %v978_v15 = vmul.f32 %v975_v63, %v962_v8  ;;  %v1064_v60 = vmul.f32 %v1055_v52, %v1050_v32 }
 0x377   :  { %v1065_v3 = vmul.f32 %v1059_v36, %v1050_v32  ;;  %v1066_v44 = vmul.f32 %v1063_v39, %v1050_v32  ;;  %v1534_v62 = vmov 1983009808  }
 0x378   :  { %v979_v16 = vadd.f32 %v976_v11, %v957_v10  ;;  %v980_v19 = vadd.f32 %v977_v14, %v958_v12  ;;  %v981_v20 = vadd.f32 %v978_v15, %v959_v13  ;;  %v1139_v63 = vunpack.c.l.s4 %v1534_v62 }
 0x379   :  { %v1107_v10 = vrot.slane %v893_v43, %v1662_v31  ;;  %v1119_v11 = vrot.slane %v1114_v7, %v1659_v29  ;;  %v1127_v13 = vrot.slane %v1114_v7, %v1666_v34 }
 0x37a   :  { %v1006_v22 = vpop.permute.xlu1 %1005  ;;  %v1001_v24 = vadd.f32 %v998_v18, %v979_v16  ;;  %v1002_v25 = vadd.f32 %v999_v49, %v980_v19  ;;  %v1003_v33 = vadd.f32 %v1000_v21, %v981_v20  ;;  %v1140_v14 = vunpack.c.0.s8 %v1139_v63 }
 0x37b   :  { %v1020_v26 = vmul.f32 %v1011_v56, %v1006_v22  ;;  %v1021_v30 = vmul.f32 %v1015_v42, %v1006_v22  ;;  %v1022_v55 = vmul.f32 %v1019_v17, %v1006_v22  ;;  %v1123_v56 = vrot.slane %v1114_v7, %v1662_v31 }
 0x37c   :  { %v1143_v22 = vsub.s32 %v1140_v14, %v1656_v27 }
 0x37d   :  { %v1023_v28 = vadd.f32 %v1020_v26, %v1001_v24  ;;  %v1024_v40 = vadd.f32 %v1021_v30, %v1002_v25  ;;  %v1025_v45 = vadd.f32 %v1022_v55, %v1003_v33 }
 0x37f   :  { %v1028_v41 = vpop.permute.xlu1 %1027 }
 0x380   :  { %v1042_v46 = vmul.f32 %v1033_v23, %v1028_v41  ;;  %v1043_v53 = vmul.f32 %v1037_v47, %v1028_v41  ;;  %v1044_v1 = vmul.f32 %v1041_v50, %v1028_v41 }
 0x382   :  { %v1045_v35 = vadd.f32 %v1042_v46, %v1023_v28  ;;  %v1046_v57 = vadd.f32 %v1043_v53, %v1024_v40  ;;  %v1047_v58 = vadd.f32 %v1044_v1, %v1025_v45 }
 0x384   :  { %v1072_v38 = vpop.permute.xlu1 %1071  ;;  %v1067_v0 = vadd.f32 %v1064_v60, %v1045_v35  ;;  %v1068_v4 = vadd.f32 %v1065_v3, %v1046_v57  ;;  %v1069_v2 = vadd.f32 %v1066_v44, %v1047_v58 }
 0x385   :  { %v1086_v5 = vmul.f32 %v1077_v54, %v1072_v38  ;;  %v1087_v6 = vmul.f32 %v1081_v37, %v1072_v38  ;;  %v1088_v8 = vmul.f32 %v1085_v48, %v1072_v38 }
 0x387   :  { %v1089_v42 = vadd.f32 %v1086_v5, %v1067_v0  ;;  %v1090_v12 = vadd.f32 %v1087_v6, %v1068_v4  ;;  %v1091_v16 = vadd.f32 %v1088_v8, %v1069_v2 }
 0x389   :  { %v1094_v15 = vpop.permute.xlu1 %1093 }
 0x38a   :  { %v1108_v17 = vmul.f32 %v1099_v61, %v1094_v15  ;;  %v1109_v18 = vmul.f32 %v1103_v9, %v1094_v15  ;;  %v1110_v49 = vmul.f32 %v1107_v10, %v1094_v15 }
 0x38c   :  { %v1111_v19 = vadd.f32 %v1108_v17, %v1089_v42  ;;  %v1112_v20 = vadd.f32 %v1109_v18, %v1090_v12  ;;  %v1113_v21 = vadd.f32 %v1110_v49, %v1091_v16 }
 0x38e   :  { %v1131_v23 = vadd.f32 %v1119_v11, %v1111_v19  ;;  %v1132_v24 = vadd.f32 %v1123_v56, %v1112_v20  ;;  %v1133_v29 = vadd.f32 %v1127_v13, %v1113_v21 }
 0x390   :  { %v1137_v25 = vcombine.low %v1131_v23, %v1132_v24  ;;  %v1151_v26 = vrot.slane %v1133_v29, %v1143_v22 }
 0x392   :  { %v1144_v31 = vrot.slane %v1137_v25, %v1143_v22 }
 0x394   :  { %v1152_v30 = vcombine.low %v1144_v31, %v1151_v26 }
 0x396   :  { %1154 = vst [vmem:[%s1800_s12] sm:$0x3f] %v1152_v30 }
 0x397   :  { %1163 = vsyncpa [#allocation3], 1 }
 0x398   :  { %1164 = vsyncpa [#allocation5], 1 }
 0x399   :  { %1165 = vsyncpa [#allocation8], 1 }
 0x39a   :  { %1166 = vsyncpa [#allocation11], 1 }

</bundles_post_ra>
